<compile_context>
chip_gen: v5e
topology: v5e:2x2
jax: 0.10.0
libtpu: 0.0.40
codegen_flags: <defaults>
</compile_context>

<pallas_src>
import functools

import jax
import jax.numpy as jnp
from jax.experimental import pallas as pl
from jax.experimental.pallas import tpu as pltpu

SMOOTH = 1e-5


def _dice_sums_kernel(x_ref, t_ref, inter_ref, zsum_ref, ysum_ref, *,
                      apply_softmax, masked, n_sub):
    """One (batch, row-tile) step.  Blocks:
         x_ref:     (C, tile_rows, 128)  logits (input dtype)
         t_ref:     (tile_rows, 128)     int32 labels (-1 == padding)
         outputs:   (C, 8, 128)          f32 partial sums, resident across the
                                         inner grid axis (accumulators).
    """
    i = pl.program_id(1)          # inner (row-tile) axis; batch is axis 0

    @pl.when(i == 0)
    def _():
        inter_ref[...] = jnp.zeros_like(inter_ref)
        zsum_ref[...] = jnp.zeros_like(zsum_ref)
        ysum_ref[...] = jnp.zeros_like(ysum_ref)

    x = x_ref[...].astype(jnp.float32)               # (C, tr, 128)
    c_dim = x.shape[0]
    labels = t_ref[...]                              # (tr, 128) int32

    if apply_softmax:
        # Channel reductions are over the leading axis -> pure elementwise VPU
        # ops across channel slabs (no cross-lane / cross-sublane traffic).
        m = jnp.max(x, axis=0, keepdims=True)        # (1, tr, 128)
        e = jnp.exp(x - m)                           # (C, tr, 128)
        denom = jnp.sum(e, axis=0, keepdims=True)    # (1, tr, 128)
        # EUP vrcp + one Newton step: full f32 accuracy, frees VPU divide work.
        r = pl.reciprocal(denom, approx=True)
        r = r * (2.0 - denom * r)
        score = e * r                                # (C, tr, 128)
    else:
        score = x

    class_ids = jax.lax.broadcasted_iota(jnp.int32, x.shape, 0)      # (C, tr, 128)
    onehot = (labels[None, :, :] == class_ids).astype(jnp.float32)   # (C, tr, 128)

    if masked:
        # Padded columns carry label -1 (onehot already 0); mask the score so
        # softmax over pad logits cannot leak into z_sum.
        score = score * (labels[None, :, :] >= 0).astype(jnp.float32)

    def rowsum(v):
        # (C, tile_rows, 128) -> (C, 8, 128): vreg-granular pairwise adds only
        # (split the sublane axis at vreg boundaries; no XLU work).
        if n_sub == 1:
            return v
        return jnp.sum(v.reshape(c_dim, n_sub, 8, 128), axis=1)

    inter_ref[...] += rowsum(score * onehot)
    zsum_ref[...] += rowsum(score * score)
    ysum_ref[...] += rowsum(onehot)                  # onehot*onehot == onehot


def _choose_tiling(hw, n_classes, x_itemsize,
                   vmem_budget_bytes=24 * 1024 * 1024):
    """Pick (tile_rows, rows_pad) for the (rows, 128) spatial layout.

    tile_rows is a multiple of the dtype sublane alignment; rows_pad is the
    (possibly padded) total row count, a multiple of tile_rows.
    """
    row_align = 8 if x_itemsize >= 4 else (16 if x_itemsize == 2 else 32)
    rows = -(-hw // 128)                                   # ceil(HW / 128)
    rows_pad = -(-rows // row_align) * row_align
    # Per-row VMEM cost of one tile: double-buffered logits + int32 labels.
    bytes_per_row = 128 * (2 * n_classes * x_itemsize + 2 * 4)
    max_rows = max(row_align,
                   (vmem_budget_bytes // bytes_per_row) // row_align * row_align)
    if rows_pad <= max_rows:
        return rows_pad, rows_pad                          # one tile per batch
    # Prefer a tile that divides rows_pad exactly (no extra padding pass).
    floor_rows = max(row_align, max_rows // 2)
    t = max_rows
    while t >= floor_rows:
        if rows_pad % t == 0:
            return t, rows_pad
        t -= row_align
    # Fall back: take the biggest tile and pad the row count up to a multiple.
    t = max_rows
    return t, -(-rows_pad // t) * t


def dice_loss_pallas(inputs, target, weight=None, softmax=True, *,
                     vmem_budget_bytes=24 * 1024 * 1024):
    """inputs: (B, C, H, W) float logits; target: (B, H, W) integer labels."""
    B, C, H, W = inputs.shape
    HW = H * W
    x_itemsize = jnp.dtype(inputs.dtype).itemsize

    tile_rows, rows_pad = _choose_tiling(HW, C, x_itemsize, vmem_budget_bytes)
    hw_pad = rows_pad * 128
    masked = hw_pad != HW
    n_tiles = rows_pad // tile_rows
    n_sub = tile_rows // 8

    # Free, contiguous reshapes: no NCHW transpose, no wrapper-side dtype cast.
    x3 = inputs.reshape(B, C, HW)
    t3 = target.astype(jnp.int32).reshape(B, HW)
    if masked:
        # TODO(synk): this pad is one extra wrapper-side copy; only triggers
        # when H*W is not already a multiple of the 8x128 row tile.
        x3 = jnp.pad(x3, ((0, 0), (0, 0), (0, hw_pad - HW)))
        t3 = jnp.pad(t3, ((0, 0), (0, hw_pad - HW)), constant_values=-1)
    x4 = x3.reshape(B, C, rows_pad, 128)
    t4 = t3.reshape(B, rows_pad, 128)

    kernel = functools.partial(_dice_sums_kernel,
                               apply_softmax=bool(softmax),
                               masked=masked, n_sub=n_sub)

    out_struct = jax.ShapeDtypeStruct((B, C, 8, 128), jnp.float32)
    out_spec = pl.BlockSpec((pl.Squeezed(), C, 8, 128),
                            lambda b, i: (b, 0, 0, 0))

    inter, zsum, ysum = pl.pallas_call(
        kernel,
        out_shape=(out_struct, out_struct, out_struct),
        grid_spec=pltpu.PrefetchScalarGridSpec(
            num_scalar_prefetch=0,
            grid=(B, n_tiles),
            in_specs=[
                pl.BlockSpec((pl.Squeezed(), C, tile_rows, 128),
                             lambda b, i: (b, 0, i, 0)),        # logits tile
                pl.BlockSpec((pl.Squeezed(), tile_rows, 128),
                             lambda b, i: (b, i, 0)),           # label tile
            ],
            out_specs=[out_spec, out_spec, out_spec],
        ),
        compiler_params=pltpu.CompilerParams(
            dimension_semantics=("parallel", "arbitrary"),
            vmem_limit_bytes=48 * 1024 * 1024),
    )(x4, t4)

    # Tiny per-class combine in plain JAX (also folds the (8,128) partial slabs
    # and the batch axis).
    inter = jnp.sum(inter, axis=(0, 2, 3))   # (C,)
    zsum = jnp.sum(zsum, axis=(0, 2, 3))     # (C,)
    ysum = jnp.sum(ysum, axis=(0, 2, 3))     # (C,)

    dice = 1.0 - (2.0 * inter + SMOOTH) / (zsum + ysum + SMOOTH)   # (C,)
    if weight is None:
        w = jnp.ones((C,), jnp.float32)
    else:
        w = jnp.asarray(weight, jnp.float32)
    return jnp.sum(dice * w) / C


def dice_loss_ref(inputs, target, weight=None):
    """Pure-JAX reference matching the PyTorch DiceLoss forward."""
    B, C, H, W = inputs.shape
    score = jax.nn.softmax(inputs.astype(jnp.float32), axis=1)
    onehot = (target[:, None, :, :].astype(jnp.int32) ==
              jnp.arange(C, dtype=jnp.int32)[None, :, None, None]
              ).astype(jnp.float32)
    if weight is None:
        weight = [1.0] * C
    loss = 0.0
    for i in range(C):
        s = score[:, i]
        t = onehot[:, i]
        inter = jnp.sum(s * t)
        y_sum = jnp.sum(t * t)
        z_sum = jnp.sum(s * s)
        dice = 1.0 - (2.0 * inter + SMOOTH) / (z_sum + y_sum + SMOOTH)
        loss = loss + dice * weight[i]
    return loss / C


if __name__ == "__main__":
    key = jax.random.PRNGKey(0)
    k1, k2 = jax.random.split(key)

    B, C, H, W = 2, 4, 16, 16
    logits = jax.random.normal(k1, (B, C, H, W), dtype=jnp.float32)
    labels = jax.random.randint(k2, (B, H, W), 0, C, dtype=jnp.int32)

    loss = jax.block_until_ready(dice_loss_pallas(logits, labels))
    ref = jax.block_until_ready(dice_loss_ref(logits, labels))
    assert jnp.allclose(loss, ref, atol=1e-5, rtol=1e-5), (loss, ref)

    print("KERNEL_OK")
</pallas_src>

<mosaic_0001>
module attributes {stable_mosaic.version = 11 : i64} {
  func.func @_dice_sums_kernel(%arg0: i32, %arg1: i32, %arg2: memref<1x4x8x128xf32, #tpu.memory_space<vmem>>, %arg3: memref<1x8x128xi32, #tpu.memory_space<vmem>>, %arg4: memref<1x4x8x128xf32, #tpu.memory_space<vmem>>, %arg5: memref<1x4x8x128xf32, #tpu.memory_space<vmem>>, %arg6: memref<1x4x8x128xf32, #tpu.memory_space<vmem>>) attributes {dimension_semantics = [#tpu.dimension_semantics<parallel>, #tpu.dimension_semantics<arbitrary>], iteration_bounds = array<i64: 2, 1>, scalar_prefetch = 0 : i64, scratch_operands = 0 : i64, tpu.core_type = #tpu.core_type<tc>, window_params = [{transform_indices = @transform_0, window_bounds = array<i64: 1, 4, 8, 128>}, {transform_indices = @transform_1, window_bounds = array<i64: 1, 8, 128>}, {transform_indices = @transform_2, window_bounds = array<i64: 1, 4, 8, 128>}, {transform_indices = @transform_3, window_bounds = array<i64: 1, 4, 8, 128>}, {transform_indices = @transform_4, window_bounds = array<i64: 1, 4, 8, 128>}]} {
    %c0_i32 = arith.constant 0 : i32
    %0 = arith.cmpi eq, %arg1, %c0_i32 : i32
    %1 = arith.extui %0 : i1 to i32
    %c0_i32_0 = arith.constant 0 : i32
    %2 = arith.cmpi ne, %1, %c0_i32_0 : i32
    scf.if %2 {
      %cst_34 = arith.constant 0.000000e+00 : f32
      %54 = vector.broadcast %cst_34 : f32 to vector<4x8x128xf32>
      %c0_35 = arith.constant 0 : index
      %c0_36 = arith.constant 0 : index
      %c0_37 = arith.constant 0 : index
      %c0_38 = arith.constant 0 : index
      %55 = vector.load %arg4[%c0_35, %c0_36, %c0_37, %c0_38] : memref<1x4x8x128xf32, #tpu.memory_space<vmem>>, vector<1x4x8x128xf32>
      %56 = vector.shape_cast %55 : vector<1x4x8x128xf32> to vector<4x8x128xf32>
      %57 = vector.shape_cast %54 : vector<4x8x128xf32> to vector<1x4x8x128xf32>
      tpu.vector_store %arg4[%c0_35, %c0_36, %c0_37, %c0_38], %57 {strides = array<i32>} : memref<1x4x8x128xf32, #tpu.memory_space<vmem>>, vector<1x4x8x128xf32>,
      %cst_39 = arith.constant 0.000000e+00 : f32
      %58 = vector.broadcast %cst_39 : f32 to vector<4x8x128xf32>
      %c0_40 = arith.constant 0 : index
      %c0_41 = arith.constant 0 : index
      %c0_42 = arith.constant 0 : index
      %c0_43 = arith.constant 0 : index
      %59 = vector.load %arg5[%c0_40, %c0_41, %c0_42, %c0_43] : memref<1x4x8x128xf32, #tpu.memory_space<vmem>>, vector<1x4x8x128xf32>
      %60 = vector.shape_cast %59 : vector<1x4x8x128xf32> to vector<4x8x128xf32>
      %61 = vector.shape_cast %58 : vector<4x8x128xf32> to vector<1x4x8x128xf32>
      tpu.vector_store %arg5[%c0_40, %c0_41, %c0_42, %c0_43], %61 {strides = array<i32>} : memref<1x4x8x128xf32, #tpu.memory_space<vmem>>, vector<1x4x8x128xf32>,
      %cst_44 = arith.constant 0.000000e+00 : f32
      %62 = vector.broadcast %cst_44 : f32 to vector<4x8x128xf32>
      %c0_45 = arith.constant 0 : index
      %c0_46 = arith.constant 0 : index
      %c0_47 = arith.constant 0 : index
      %c0_48 = arith.constant 0 : index
      %63 = vector.load %arg6[%c0_45, %c0_46, %c0_47, %c0_48] : memref<1x4x8x128xf32, #tpu.memory_space<vmem>>, vector<1x4x8x128xf32>
      %64 = vector.shape_cast %63 : vector<1x4x8x128xf32> to vector<4x8x128xf32>
      %65 = vector.shape_cast %62 : vector<4x8x128xf32> to vector<1x4x8x128xf32>
      tpu.vector_store %arg6[%c0_45, %c0_46, %c0_47, %c0_48], %65 {strides = array<i32>} : memref<1x4x8x128xf32, #tpu.memory_space<vmem>>, vector<1x4x8x128xf32>,
    } else {
    }
    %c0 = arith.constant 0 : index
    %c0_1 = arith.constant 0 : index
    %c0_2 = arith.constant 0 : index
    %c0_3 = arith.constant 0 : index
    %3 = vector.load %arg2[%c0, %c0_1, %c0_2, %c0_3] : memref<1x4x8x128xf32, #tpu.memory_space<vmem>>, vector<1x4x8x128xf32>
    %4 = vector.shape_cast %3 : vector<1x4x8x128xf32> to vector<4x8x128xf32>
    %c0_4 = arith.constant 0 : index
    %c0_5 = arith.constant 0 : index
    %c0_6 = arith.constant 0 : index
    %5 = vector.load %arg3[%c0_4, %c0_5, %c0_6] : memref<1x8x128xi32, #tpu.memory_space<vmem>>, vector<1x8x128xi32>
    %6 = vector.shape_cast %5 : vector<1x8x128xi32> to vector<8x128xi32>
    %cst = arith.constant dense<0xFF800000> : vector<8x128xf32>
    %7 = vector.multi_reduction <maximumf>, %4, %cst [0] : vector<4x8x128xf32> to vector<8x128xf32>
    %8 = vector.shape_cast %7 : vector<8x128xf32> to vector<1x8x128xf32>
    %9 = vector.broadcast %8 : vector<1x8x128xf32> to vector<4x8x128xf32>
    %10 = arith.subf %4, %9 : vector<4x8x128xf32>
    %11 = math.exp %10 : vector<4x8x128xf32>
    %cst_7 = arith.constant dense<0.000000e+00> : vector<8x128xf32>
    %12 = vector.multi_reduction <add>, %11, %cst_7 [0] : vector<4x8x128xf32> to vector<8x128xf32>
    %13 = vector.shape_cast %12 : vector<8x128xf32> to vector<1x8x128xf32>
    %14 = tpu.reciprocal %13 {approx = true} : vector<1x8x128xf32> -> vector<1x8x128xf32>
    %15 = arith.mulf %13, %14 : vector<1x8x128xf32>
    %cst_8 = arith.constant 2.000000e+00 : f32
    %16 = vector.broadcast %cst_8 : f32 to vector<1x8x128xf32>
    %17 = arith.subf %16, %15 : vector<1x8x128xf32>
    %18 = arith.mulf %14, %17 : vector<1x8x128xf32>
    %19 = vector.broadcast %18 : vector<1x8x128xf32> to vector<4x8x128xf32>
    %20 = arith.mulf %11, %19 : vector<4x8x128xf32>
    %21 = tpu.iota {dimensions = array<i32: 0>} : vector<4x8x128xi32>
    %22 = vector.shape_cast %6 : vector<8x128xi32> to vector<1x8x128xi32>
    %23 = vector.broadcast %22 : vector<1x8x128xi32> to vector<4x8x128xi32>
    %24 = arith.cmpi eq, %23, %21 : vector<4x8x128xi32>
    %25 = arith.extui %24 : vector<4x8x128xi1> to vector<4x8x128xi32>
    %26 = arith.sitofp %25 : vector<4x8x128xi32> to vector<4x8x128xf32>
    %27 = vector.shape_cast %6 : vector<8x128xi32> to vector<1x8x128xi32>
    %c0_i32_9 = arith.constant 0 : i32
    %28 = vector.broadcast %c0_i32_9 : i32 to vector<1x8x128xi32>
    %29 = arith.cmpi sge, %27, %28 : vector<1x8x128xi32>
    %30 = arith.extui %29 : vector<1x8x128xi1> to vector<1x8x128xi32>
    %31 = arith.sitofp %30 : vector<1x8x128xi32> to vector<1x8x128xf32>
    %32 = vector.broadcast %31 : vector<1x8x128xf32> to vector<4x8x128xf32>
    %33 = arith.mulf %20, %32 : vector<4x8x128xf32>
    %c0_10 = arith.constant 0 : index
    %c0_11 = arith.constant 0 : index
    %c0_12 = arith.constant 0 : index
    %c0_13 = arith.constant 0 : index
    %34 = vector.load %arg4[%c0_10, %c0_11, %c0_12, %c0_13] : memref<1x4x8x128xf32, #tpu.memory_space<vmem>>, vector<1x4x8x128xf32>
    %35 = vector.shape_cast %34 : vector<1x4x8x128xf32> to vector<4x8x128xf32>
    %36 = arith.mulf %33, %26 : vector<4x8x128xf32>
    %37 = arith.addf %35, %36 : vector<4x8x128xf32>
    %c0_14 = arith.constant 0 : index
    %c0_15 = arith.constant 0 : index
    %c0_16 = arith.constant 0 : index
    %c0_17 = arith.constant 0 : index
    %38 = vector.load %arg4[%c0_14, %c0_15, %c0_16, %c0_17] : memref<1x4x8x128xf32, #tpu.memory_space<vmem>>, vector<1x4x8x128xf32>
    %39 = vector.shape_cast %38 : vector<1x4x8x128xf32> to vector<4x8x128xf32>
    %40 = vector.shape_cast %37 : vector<4x8x128xf32> to vector<1x4x8x128xf32>
    tpu.vector_store %arg4[%c0_14, %c0_15, %c0_16, %c0_17], %40 {strides = array<i32>} : memref<1x4x8x128xf32, #tpu.memory_space<vmem>>, vector<1x4x8x128xf32>,
    %c0_18 = arith.constant 0 : index
    %c0_19 = arith.constant 0 : index
    %c0_20 = arith.constant 0 : index
    %c0_21 = arith.constant 0 : index
    %41 = vector.load %arg5[%c0_18, %c0_19, %c0_20, %c0_21] : memref<1x4x8x128xf32, #tpu.memory_space<vmem>>, vector<1x4x8x128xf32>
    %42 = vector.shape_cast %41 : vector<1x4x8x128xf32> to vector<4x8x128xf32>
    %43 = arith.mulf %33, %33 : vector<4x8x128xf32>
    %44 = arith.addf %42, %43 : vector<4x8x128xf32>
    %c0_22 = arith.constant 0 : index
    %c0_23 = arith.constant 0 : index
    %c0_24 = arith.constant 0 : index
    %c0_25 = arith.constant 0 : index
    %45 = vector.load %arg5[%c0_22, %c0_23, %c0_24, %c0_25] : memref<1x4x8x128xf32, #tpu.memory_space<vmem>>, vector<1x4x8x128xf32>
    %46 = vector.shape_cast %45 : vector<1x4x8x128xf32> to vector<4x8x128xf32>
    %47 = vector.shape_cast %44 : vector<4x8x128xf32> to vector<1x4x8x128xf32>
    tpu.vector_store %arg5[%c0_22, %c0_23, %c0_24, %c0_25], %47 {strides = array<i32>} : memref<1x4x8x128xf32, #tpu.memory_space<vmem>>, vector<1x4x8x128xf32>,
    %c0_26 = arith.constant 0 : index
    %c0_27 = arith.constant 0 : index
    %c0_28 = arith.constant 0 : index
    %c0_29 = arith.constant 0 : index
    %48 = vector.load %arg6[%c0_26, %c0_27, %c0_28, %c0_29] : memref<1x4x8x128xf32, #tpu.memory_space<vmem>>, vector<1x4x8x128xf32>
    %49 = vector.shape_cast %48 : vector<1x4x8x128xf32> to vector<4x8x128xf32>
    %50 = arith.addf %49, %26 : vector<4x8x128xf32>
    %c0_30 = arith.constant 0 : index
    %c0_31 = arith.constant 0 : index
    %c0_32 = arith.constant 0 : index
    %c0_33 = arith.constant 0 : index
    %51 = vector.load %arg6[%c0_30, %c0_31, %c0_32, %c0_33] : memref<1x4x8x128xf32, #tpu.memory_space<vmem>>, vector<1x4x8x128xf32>
    %52 = vector.shape_cast %51 : vector<1x4x8x128xf32> to vector<4x8x128xf32>
    %53 = vector.shape_cast %50 : vector<4x8x128xf32> to vector<1x4x8x128xf32>
    tpu.vector_store %arg6[%c0_30, %c0_31, %c0_32, %c0_33], %53 {strides = array<i32>} : memref<1x4x8x128xf32, #tpu.memory_space<vmem>>, vector<1x4x8x128xf32>,
    return
  }
  func.func @transform_0(%arg0: i32, %arg1: i32) -> (i32, i32, i32, i32) {
    %c0_i32 = arith.constant 0 : i32
    %c0_i32_0 = arith.constant 0 : i32
    %c0_i32_1 = arith.constant 0 : i32
    return %arg0, %c0_i32, %arg1, %c0_i32_0 : i32, i32, i32, i32
  }
  func.func @transform_1(%arg0: i32, %arg1: i32) -> (i32, i32, i32) {
    %c0_i32 = arith.constant 0 : i32
    %c0_i32_0 = arith.constant 0 : i32
    return %arg0, %arg1, %c0_i32 : i32, i32, i32
  }
  func.func @transform_2(%arg0: i32, %arg1: i32) -> (i32, i32, i32, i32) {
    %c0_i32 = arith.constant 0 : i32
    %c0_i32_0 = arith.constant 0 : i32
    %c0_i32_1 = arith.constant 0 : i32
    %c0_i32_2 = arith.constant 0 : i32
    return %arg0, %c0_i32, %c0_i32_0, %c0_i32_1 : i32, i32, i32, i32
  }
  func.func @transform_3(%arg0: i32, %arg1: i32) -> (i32, i32, i32, i32) {
    %c0_i32 = arith.constant 0 : i32
    %c0_i32_0 = arith.constant 0 : i32
    %c0_i32_1 = arith.constant 0 : i32
    %c0_i32_2 = arith.constant 0 : i32
    return %arg0, %c0_i32, %c0_i32_0, %c0_i32_1 : i32, i32, i32, i32
  }
  func.func @transform_4(%arg0: i32, %arg1: i32) -> (i32, i32, i32, i32) {
    %c0_i32 = arith.constant 0 : i32
    %c0_i32_0 = arith.constant 0 : i32
    %c0_i32_1 = arith.constant 0 : i32
    %c0_i32_2 = arith.constant 0 : i32
    return %arg0, %c0_i32, %c0_i32_0, %c0_i32_1 : i32, i32, i32, i32
  }
}

</mosaic_0001>

<bundles_post_ra>
// kernel: tpu_custom_call.1
= control target key start
LH: loop header
LB: loop body
LE: loop exit
PB: predicated region body
PF: predicated region fallthrough
CT: control target
= control target key end

     0   :  { %s1225_s0 = inlined_call_operand.hbm [shape: f32[2,4,8,128], index: 0, kind: input, shape index: {}]   ;;  %s1226_s1 = inlined_call_operand.hbm [shape: s32[2,8,128], index: 1, kind: input, shape index: {}]   ;;  %s1227_s2 = inlined_call_operand.hbm [shape: f32[2,4,8,128], index: 2, kind: output, shape index: {0}]   ;;  %s1228_s3 = inlined_call_operand.hbm [shape: f32[2,4,8,128], index: 3, kind: output, shape index: {1}]   ;;  %s1229_s4 = inlined_call_operand.hbm [shape: f32[2,4,8,128], index: 4, kind: output, shape index: {2}]  }
   0x1   :  { %1232 = sst [smem:[#allocation16_spill]] %s1225_s0 }
   0x2   :  { %10 = vsyncpa [#allocation3], 0 }
   0x3   :  { %12 = vsyncpa [#allocation3 + $0x1], 0 }
   0x4   :  { %13 = vsyncpa [#allocation6], 0 }
   0x5   :  { %15 = vsyncpa [#allocation6 + $0x1], 0 }
   0x6   :  { %16 = vsyncpa [#allocation4], 0 }
   0x7   :  { %18 = vsyncpa [#allocation4 + $0x1], 0 }
   0x8   :  { %19 = vsyncpa [#allocation9], 0 }
   0x9   :  { %21 = vsyncpa [#allocation9 + $0x1], 0  ;;  %s998_s15 = smov 0   ;;  %s1000_s16 = smov 0  }
   0xa   :  { %s1002_s17 = smov 0   ;;  %s1004_s18 = smov 0  }
   0xb   :  { %s1006_s19 = smov 0   ;;  %s1008_s20 = smov 0  }
   0xc LB: > { %s1029_s21 = sadd.s32 4294967295, %s966_s20   ;;  %s1230_s22 = sadd.s32 4294967294, %s966_s20   ;;  %s966_s20 = sphi %s1008_s20, %s27_s20   ;;  %s962_s19 = sphi %s1006_s19, %s1246_s19   ;;  %s958_s18 = sphi %s1004_s18, %s1245_s18   ;;  %s954_s17 = sphi %s1002_s17, %s1244_s17   ;;  %s950_s16 = sphi %s1000_s16, %s1243_s16   ;;  %s946_s15 = sphi %s998_s15, %s1242_s15  }
   0xd   : > { %s39_s23 = sadd.s32 1, %s962_s19  ;;  %s48_s24 = sadd.s32 1, %s954_s17 }
   0xe   : > { %p41_p0 = scmp.ge.s32.totalorder %s39_s23, 2  ;;  %p55_p1 = scmp.ne.s32.totalorder %s954_s17, %s950_s16 }
   0xf   : > { %p56_p2 = scmp.eq.s32.totalorder %s966_s20, 0  ;;  %p61_p3 = scmp.ne.s32.totalorder %s950_s16, %s946_s15 }
  0x10   : > { %s1248_s23 = smov (%p41_p0, %s39_s23), 0  ;;  %p62_p5 = scmp.eq.s32.totalorder %s1029_s21, 0 }
  0x11   : > { %1233 = sst [smem:[#allocation15_spill]] %s1248_s23  ;;  %p1041_p4 = por %p56_p2, %p55_p1 }
  0x12   : > { %s43_s26 = ssub.s32 %s962_s19, %s1248_s23  ;;  %p113_p6 = scmp.eq.s32.totalorder %s1029_s21, 1 }
  0x13   : > { %p46_p7 = scmp.eq.s32.totalorder %s43_s26, 0  ;;  %p1049_p8 = por %p62_p5, %p61_p3 }
  0x14   : > { %p1053_p9 = por %p113_p6, %p55_p1  ;;  %p119_p10 = scmp.eq.s32.totalorder %s1230_s22, 1 }
  0x15   : > { %s1060_s29 = scalar_select %p46_p7, %s954_s17, %s48_s24  }
  0x16   : > { %p1062_p11 = por %p119_p10, %p61_p3  ;;  %p636_p12 = scmp.ge.s32.totalorder %s966_s20, 2 }
  0x17   : > { %p695_p13 = scmp.lt.s32.totalorder %s966_s20, 2  ;;  %s191_s5 = sand.u32 1, %s954_s17  }
  0x18   : > { %s637_s6 = sshll.u32 %s191_s5, 5  ;;  %s664_s7 = sshll.u32 %s962_s19, 5 }
  0x19   : > { %s1238_s0 = sld [smem:[#allocation16_spill]]  ;;  %s195_s11 = scalar_lea.vmem [#allocation2], %s637_s6 }
  0x1a   : > { %s204_s12 = sshll.u32 %s195_s11, 4  ;;  %p1075_p0 = pnand %p695_p13, %p1041_p4  ;;  %s205_s12 = int_to_ptr.vmem [resolvable:$true] %s204_s12 }
  0x1b   : > { %p642_p1 = scmp.ge.s32.totalorder %s966_s20, 1  ;;  %s192_s24 = scalar_lea.sflag [#allocation3], %s191_s5 }
  0x1c   : > { %s968_s26 = smov 128   ;;  %s969_s22 = smov 8  }
  0x1d   : > { %p232_p2 = scmp.lt.s32.totalorder %s966_s20, 3  ;;  %s641_s6 = sshll.u32 %s962_s19, 3 }
  0x1e   : > { %s223_s25 = scalar_lea.hbm %s1226_s1, %s641_s6  ;;  %s215_s23 = scalar_lea.sflag [#allocation6], %s191_s5 }
  0x1f   : > { %s201_s10 = scalar_lea.hbm %s1238_s0, %s664_s7  ;;  %s640_s7 = sshll.u32 %s191_s5, 3 }
  0x20   : > { %s202_s13 = sshll.u32 %s201_s10, 4  ;;  %p233_p3 = pnand %p642_p1, %p232_p2  ;;  %s203_s13 = int_to_ptr.hbm [resolvable:$true] %s202_s13 }
  0x21   : > { %681 = dma.hbm_to_vmem [thread:$0]  (!%p1075_p0), %s203_s13, 512, %s205_s12, %s192_s24, %s968_s26, %s968_s26, %s969_s22  }
  0x22   : > { %s218_s10 = scalar_lea.vmem [#allocation5], %s640_s7  ;;  %s225_s0 = sshll.u32 %s223_s25, 4  ;;  %s226_s0 = int_to_ptr.hbm [resolvable:$true] %s225_s0 }
  0x23   : > { %s227_s11 = sshll.u32 %s218_s10, 4  ;;  %236 = sbr.rel (%p233_p3) target bundleno = 122 (0x7a), region = 28  ;;  %s228_s11 = int_to_ptr.vmem [resolvable:$true] %s227_s11 }
  0x24   : > { %684 = dma.hbm_to_vmem [thread:$0]  (!%p1075_p0), %s226_s0, 128, %s228_s11, %s215_s23  }
  0x25   : > { %s1090_s22 = sand.u32 (!%p233_p3), 1, %s950_s16  }
  0x26   : > { %s1093_s12 = sshll.u32 (!%p233_p3), %s1090_s22, 5  ;;  %s239_s13 = scalar_lea.sflag (!%p233_p3), [#allocation3], %s1090_s22 }
  0x27   : > { %s242_s24 = scalar_lea.vmem (!%p233_p3), [#allocation2], %s1093_s12 }
  0x28   : > { %929 = dma.done.wait (%p1049_p8), %s239_s13, 512  }
  0x29   : > { %931 = vsyncadd (%p1049_p8), %s239_s13, 4294966784  ;;  %s644_s0 = sshll.u32 %s1090_s22, 3  ;;  %s249_s23 = scalar_lea.sflag [#allocation6], %s1090_s22 }
  0x2a   : > { %s252_s5 = scalar_lea.vmem [#allocation5], %s644_s0 }
  0x2b   : > { %933 = dma.done.wait (%p1049_p8), %s249_s23, 128  }
  0x2c   : > { %935 = vsyncadd (%p1049_p8), %s249_s23, 4294967168  ;;  %v309_v0 = vld [vmem:[%s242_s24] sm:$0xff]  ;;  %v310_v1 = vld [vmem:[%s242_s24 + $0x8] sm:$0xff]  ;;  %v970_v18 = vmov 0.0   ;;  %s1108_s27 = scalar_lea.vmem [#allocation10], %s1093_s12  ;;  %s408_s14 = sand.u32 1, %s1029_s21  }
  0x2d   : > { %v311_v2 = vld [vmem:[%s242_s24 + $0x10] sm:$0xff]  ;;  %v312_v3 = vld [vmem:[%s242_s24 + $0x18] sm:$0xff]  ;;  %v314_v4 = vmax.f32 %v309_v0, %v310_v1  ;;  %v313_v15 = vld [vmem:[%s252_s5] sm:$0xff]  ;;  %s665_s26 = sshll.u32 %s958_s18, 5  ;;  %s285_s9 = scalar_lea.vmem [#allocation8], %s1093_s12 }
  0x2e   : > { %v315_v5 = vmax.f32 %v311_v2, %v312_v3  ;;  %vm340_vm0 = vcmp.eq.s32.totalorder %v313_v15, 0  ;;  %vm341_vm1 = vcmp.eq.s32.totalorder %v313_v15, 1  ;;  %vm342_vm2 = vcmp.eq.s32.totalorder %v313_v15, 2  ;;  %s442_s8 = scalar_lea.hbm %s1228_s3, %s665_s26  ;;  %s443_s25 = sshll.u32 %s285_s9, 4  ;;  %s1126_s25 = int_to_ptr.vmem [resolvable:$true] %s443_s25 }
  0x2f   : > { %vm343_vm3 = vcmp.eq.s32.totalorder %v313_v15, 3  ;;  %v648_v19 = vsel %vm340_vm0, 1.0, %v970_v18  ;;  %v649_v20 = vsel %vm341_vm1, 1.0, %v970_v18  ;;  %v650_v21 = vsel %vm342_vm2, 1.0, %v970_v18  ;;  %s425_s13 = scalar_lea.hbm %s1227_s2, %s665_s26  ;;  %s459_s0 = scalar_lea.hbm %s1229_s4, %s665_s26 }
  0x30   : > { %v316_v6 = vmax.f32 %v314_v4, %v315_v5  ;;  %v651_v22 = vsel %vm343_vm3, 1.0, %v970_v18  ;;  %399 = vst [vmem:[%s1108_s27] sm:$0xff] %v648_v19  ;;  %vm352_vm4 = vcmp.ge.s32.totalorder %v313_v15, 0  ;;  %s1128_s23 = sshll.u32 %s442_s8, 4  ;;  %s278_s5 = scalar_lea.vmem [#allocation7], %s1093_s12  ;;  %s446_s23 = int_to_ptr.hbm [resolvable:$true] %s1128_s23 }
  0x31   : > { %400 = vst [vmem:[%s1108_s27 + $0x8] sm:$0xff] %v649_v20  ;;  %v652_v32 = vsel %vm352_vm4, 1.0, %v970_v18  ;;  %s426_s7 = sshll.u32 %s278_s5, 4  ;;  %s1131_s6 = sshll.u32 %s425_s13, 4  ;;  %s1137_s7 = int_to_ptr.vmem [resolvable:$true] %s426_s7  ;;  %s429_s6 = int_to_ptr.hbm [resolvable:$true] %s1131_s6 }
  0x32   : > { %v317_v7 = vsub.f32 %v309_v0, %v316_v6  ;;  %v318_v8 = vsub.f32 %v310_v1, %v316_v6  ;;  %v319_v9 = vsub.f32 %v311_v2, %v316_v6  ;;  %v320_v10 = vsub.f32 %v312_v3, %v316_v6  ;;  %401 = vst [vmem:[%s1108_s27 + $0x10] sm:$0xff] %v650_v21  ;;  %s1133_s10 = sshll.u32 %s459_s0, 4  ;;  %s460_s11 = sshll.u32 %s1108_s27, 4  ;;  %s1140_s11 = int_to_ptr.vmem [resolvable:$true] %s460_s11  ;;  %s463_s10 = int_to_ptr.hbm [resolvable:$true] %s1133_s10 }
  0x33   : > { %402 = vst [vmem:[%s1108_s27 + $0x18] sm:$0xff] %v651_v22  ;;  %s1145_s12 = scalar_lea.sflag [#allocation9], %s408_s14  ;;  %s834_s26 = sshra.s32 %s446_s23, 4  ;;  %s835_s26 = int_to_ptr.hbm [resolvable:$true] %s834_s26 }
  0x34   : > { %v321_v11 = vmul.f32 1.442695, %v317_v7  ;;  %v323_v12 = vmul.f32 1.442695, %v318_v8  ;;  %v325_v13 = vmul.f32 1.442695, %v319_v9  ;;  %p841_p7 = scmp.lt.s32.totalorder %s835_s26, %s1228_s3 }
  0x35   : > { %v327_v14 = vmul.f32 1.442695, %v320_v10  ;;  %s836_s8 = scalar_lea.hbm %s835_s26, 32  ;;  %s840_s13 = scalar_lea.hbm %s1228_s3, 64 }
  0x36   : > { %750 = vpow2.f32 %v321_v11  ;;  %p837_p4 = scmp.ne.s32.totalorder %s835_s26, %s836_s8  ;;  %p842_p8 = scmp.lt.s32.totalorder %s840_s13, %s836_s8 }
  0x37   : > { %752 = vpow2.f32 %v323_v12 }
  0x38   : > { %754 = vpow2.f32 %v325_v13  ;;  %p838_p5 = pnand %p837_p4, %p1053_p9  ;;  %p843_p10 = por %p842_p8, %p841_p7 }
  0x39   : > { %756 = vpow2.f32 %v327_v14 }
  0x3a   : > { %p839_p6 = pneg %p838_p5 }
  0x3c   : > { %v751_v16 = vpop.eup %750  ;;  %p844_p13 = pnand %p843_p10, %p839_p6 }
  0x3d   : > { %v753_v17 = vpop.eup %752 }
  0x3e   : > { %v755_v23 = vpop.eup %754  ;;  %v329_v24 = vadd.f32 %v753_v17, %v751_v16 }
  0x3f   : > { %v757_v25 = vpop.eup %756 }
  0x40   : > { %v330_v26 = vadd.f32 %v755_v23, %v329_v24 }
  0x42   : > { %v331_v27 = vadd.f32 %v757_v25, %v330_v26 }
  0x44   : > { %758 = vrcp.f32 %v331_v27 }
  0x4a   : > { %v759_v28 = vpop.eup %758 }
  0x4b   : > { %v333_v29 = vmul.f32 %v759_v28, %v331_v27 }
  0x4d   : > { %v334_v30 = vsub.f32 2.0, %v333_v29 }
  0x4f   : > { %v335_v31 = vmul.f32 %v759_v28, %v334_v30 }
  0x51   : > { %v336_v33 = vmul.f32 %v751_v16, %v335_v31  ;;  %v337_v34 = vmul.f32 %v753_v17, %v335_v31  ;;  %v338_v35 = vmul.f32 %v755_v23, %v335_v31  ;;  %v339_v36 = vmul.f32 %v757_v25, %v335_v31 }
  0x53   : > { %v355_v37 = vmul.f32 %v652_v32, %v336_v33  ;;  %v356_v38 = vmul.f32 %v652_v32, %v337_v34  ;;  %v357_v39 = vmul.f32 %v652_v32, %v338_v35  ;;  %v358_v40 = vmul.f32 %v652_v32, %v339_v36 }
  0x55   : > { %v379_v41 = vmul.f32 %v355_v37, %v355_v37  ;;  %v380_v42 = vmul.f32 %v356_v38, %v356_v38  ;;  %v381_v43 = vmul.f32 %v357_v39, %v357_v39  ;;  %v382_v44 = vmul.f32 %v358_v40, %v358_v40 }
  0x56   : > { %v363_v45 = vmul.f32 %v648_v19, %v355_v37  ;;  %v364_v46 = vmul.f32 %v649_v20, %v356_v38  ;;  %v365_v47 = vmul.f32 %v650_v21, %v357_v39  ;;  %v366_v48 = vmul.f32 %v651_v22, %v358_v40 }
  0x57   : > { %387 = vst [vmem:[%s285_s9] sm:$0xff] %v379_v41 }
  0x58   : > { %388 = vst [vmem:[%s285_s9 + $0x8] sm:$0xff] %v380_v42 }
  0x59   : > { %389 = vst [vmem:[%s285_s9 + $0x10] sm:$0xff] %v381_v43 }
  0x5a   : > { %390 = vst [vmem:[%s285_s9 + $0x18] sm:$0xff] %v382_v44 }
  0x5b   : > { %371 = vst [vmem:[%s278_s5] sm:$0xff] %v363_v45 }
  0x5c   : > { %372 = vst [vmem:[%s278_s5 + $0x8] sm:$0xff] %v364_v46 }
  0x5d   : > { %373 = vst [vmem:[%s278_s5 + $0x10] sm:$0xff] %v365_v47 }
  0x5e   : > { %374 = vst [vmem:[%s278_s5 + $0x18] sm:$0xff] %v366_v48 }
  0x5f   : > { %847 = shalt.err (!%p844_p13)
}
  0x60   : > { %s971_s21 = smov 128   ;;  %s972_s14 = smov 8  }
  0x61   : > { %673 = dma.vmem_to_hbm [thread:$0]  (%p1053_p9), %s1126_s25, 512, %s446_s23, %s1145_s12, %s971_s21, %s971_s21, %s972_s14  }
  0x62   : > { %s404_s0 = scalar_lea.sflag [#allocation4], %s1090_s22  ;;  %s862_s5 = sshra.s32 %s429_s6, 4  ;;  %s863_s5 = int_to_ptr.hbm [resolvable:$true] %s862_s5 }
  0x63   : > { %s864_s26 = scalar_lea.hbm %s863_s5, 32  ;;  %s868_s9 = scalar_lea.hbm %s1227_s2, 64 }
  0x64   : > { %p865_p0 = scmp.ne.s32.totalorder %s863_s5, %s864_s26  ;;  %p869_p3 = scmp.lt.s32.totalorder %s863_s5, %s1227_s2 }
  0x65   : > { %p870_p4 = scmp.lt.s32.totalorder %s868_s9, %s864_s26 }
  0x66   : > { %p866_p1 = pnand %p865_p0, %p1053_p9 }
  0x67   : > { %p871_p5 = por %p870_p4, %p869_p3 }
  0x68   : > { %p867_p2 = pneg %p866_p1 }
  0x6a   : > { %p872_p6 = pnand %p871_p5, %p867_p2 }
  0x6c   : > { %875 = shalt.err (!%p872_p6)
}
  0x6d   : > { %672 = dma.vmem_to_hbm [thread:$0]  (%p1053_p9), %s1137_s7, 512, %s429_s6, %s404_s0, %s971_s21, %s971_s21, %s972_s14  }
  0x6e   : > { %s890_s22 = sshra.s32 %s463_s10, 4  ;;  %s896_s5 = scalar_lea.hbm %s1229_s4, 64  ;;  %s891_s22 = int_to_ptr.hbm [resolvable:$true] %s890_s22 }
  0x6f   : > { %s892_s25 = scalar_lea.hbm %s891_s22, 32  ;;  %p897_p13 = scmp.lt.s32.totalorder %s891_s22, %s1229_s4 }
  0x70   : > { %p893_p7 = scmp.ne.s32.totalorder %s891_s22, %s892_s25  ;;  %p898_p0 = scmp.lt.s32.totalorder %s896_s5, %s892_s25 }
  0x72   : > { %p894_p8 = pnand %p893_p7, %p1053_p9  ;;  %p899_p1 = por %p898_p0, %p897_p13 }
  0x74   : > { %p895_p10 = pneg %p894_p8 }
  0x76   : > { %p900_p2 = pnand %p899_p1, %p895_p10 }
  0x78   : > { %903 = shalt.err (!%p900_p2)
}
  0x79   : > { %674 = dma.vmem_to_hbm [thread:$0]  (%p1053_p9), %s1140_s11, 512, %s463_s10, %s1145_s12, %s971_s21, %s971_s21, %s972_s14  }
  0x7a PF: > { %s477_s7 = sand.u32 1, %s946_s15   ;;  %p686_p3 = pnand %p636_p12, %p1062_p11 }
  0x7b   : > { %s478_s6 = scalar_lea.sflag [#allocation4], %s477_s7 }
  0x7c   : > { %p687_p4 = pneg %p686_p3 }
  0x7e   : > { %937 = dma.done.wait (%p687_p4), %s478_s6, 512  }
  0x7f   : > { %939 = vsyncadd (%p687_p4), %s478_s6, 4294966784  ;;  %s1240_s28 = sadd.s32 4294967294, %s966_s20  }
  0x80   : > { %s487_s0 = sand.u32 1, %s1240_s28  }
  0x81   : > { %s488_s27 = scalar_lea.sflag [#allocation9], %s487_s0 }
  0x82   : > { %941 = dma.done.wait (%p687_p4), %s488_s27, 1024  }
  0x83   : > { %943 = vsyncadd (%p687_p4), %s488_s27, 4294966272  ;;  %s27_s20 = sadd.s32 1, %s966_s20   ;;  %s1241_s30 = sld [smem:[#allocation15_spill]] }
  0x84   : > { %p24_p9 = scmp.ge.s32.totalorder %s27_s20, 4   ;;  %s1242_s15 = smov %s950_s16 }
  0x85   : > { %s1243_s16 = smov %s954_s17  ;;  %s1244_s17 = smov %s1060_s29 }
  0x86   : > { %s1245_s18 = smov %s962_s19  ;;  %26 = sbr.rel (!%p24_p9) target bundleno = 12 (0xc), region = 122 }
  0x89   : > { %s1246_s19 = smov %s1241_s30 }
  0x8b   :  { %504 = vsyncpa [#allocation3], 1 }
  0x8c   :  { %506 = vsyncpa [#allocation3 + $0x1], 1 }
  0x8d   :  { %507 = vsyncpa [#allocation6], 1 }
  0x8e   :  { %509 = vsyncpa [#allocation6 + $0x1], 1 }
  0x8f   :  { %510 = vsyncpa [#allocation4], 1 }
  0x90   :  { %512 = vsyncpa [#allocation4 + $0x1], 1 }
  0x91   :  { %513 = vsyncpa [#allocation9], 1 }
  0x92   :  { %515 = vsyncpa [#allocation9 + $0x1], 1 }

</bundles_post_ra>
